<compile_context>
chip_gen: v5e
topology: v5e:2x2
jax: 0.10.0
libtpu: 0.0.40
codegen_flags: <defaults>
</compile_context>

<pallas_src>
import functools

import jax
import jax.numpy as jnp
from jax.experimental import pallas as pl
from jax.experimental.pallas import tpu as pltpu


def _round_up(n, m):
    return (n + m - 1) // m * m


def _ae_kernel(x_ref,
               w1_ref, b1_ref,
               w2_ref, b2_ref,
               w35_ref, b35_ref,
               wf_ref, bf_ref,
               out_ref):
    # Dropout (eval) == identity; all BatchNorms are pre-folded into W/b.
    # x arrives f32 from HBM; cast to bf16 in-kernel (VPU has slack), so the
    # wrapper never pays a separate HBM pass just to cast the input.
    x = x_ref[...].astype(jnp.bfloat16)                               # [T, D_in]

    # ---- encoder ----
    h1 = jnp.dot(x, w1_ref[...], preferred_element_type=jnp.float32) + b1_ref[...]
    h1 = jnp.maximum(h1, 0.0).astype(jnp.bfloat16)                    # BN1 folded + ReLU
    h2 = jnp.dot(h1, w2_ref[...], preferred_element_type=jnp.float32) + b2_ref[...]
    h2 = jnp.maximum(h2, 0.0).astype(jnp.bfloat16)                    # BN2 folded + ReLU

    # ---- fused first layers of risk-regressor and decoder (both consume h2) ----
    y = jnp.dot(h2, w35_ref[...], preferred_element_type=jnp.float32) + b35_ref[...]
    y = jnp.maximum(y, 0.0).astype(jnp.bfloat16)                      # [T, half+u1] = [r1 | d1]

    # ---- fused final layer: block-diagonal [w4 ; w6] -> lane-dense slab ----
    # columns [0:d_in] = decoded, column [d_in] = risk, rest = 0 padding.
    # Stored bf16: halves the dominant HBM output-write stream vs f32.
    out = jnp.dot(y, wf_ref[...], preferred_element_type=jnp.float32) + bf_ref[...]
    out_ref[...] = out.astype(out_ref.dtype)


def _fold_linear_bn(w, b, gamma, beta, mean, var, eps=1e-5):
    """Fold eval-mode BatchNorm1d following a Linear into the Linear's W (in,out) / b."""
    scale = gamma / jnp.sqrt(var + eps)
    shift = beta - mean * scale
    return w * scale[None, :], b * scale + shift


def prepare_baseline_bn_params(params):
    """One-time parameter transform, hoisted out of the per-call forward.

    Does BN folding, the w3/w5 concat, the block-diagonal [w6; w4] fusion into a
    lane-dense output slab, and the bf16 casts of all matmul weights.
    """
    w1, b1 = _fold_linear_bn(params["w1"], params["b1"], params["bn1_g"],
                             params["bn1_b"], params["bn1_m"], params["bn1_v"])
    w2, b2 = _fold_linear_bn(params["w2"], params["b2"], params["bn2_g"],
                             params["bn2_b"], params["bn2_m"], params["bn2_v"])
    w3, b3 = _fold_linear_bn(params["w3"], params["b3"], params["bn3_g"],
                             params["bn3_b"], params["bn3_m"], params["bn3_v"])
    w5, b5 = _fold_linear_bn(params["w5"], params["b5"], params["bn5_g"],
                             params["bn5_b"], params["bn5_m"], params["bn5_v"])

    d_in = params["w1"].shape[0]
    half = w3.shape[1]            # risk hidden width
    u1 = w5.shape[1]              # decoder hidden width (= num_ae_units1)

    # Fuse the two h2-consuming matmuls: output columns ordered [r1 | d1].
    w35 = jnp.concatenate([w3, w5], axis=1)                   # [u2, half+u1]
    b35 = jnp.concatenate([b3, b5], axis=0)                   # [half+u1]

    # Block-diagonal fusion of the N=1 risk head with the decoder's final layer,
    # padded to a lane-dense 128-multiple output slab.
    out_w = _round_up(d_in + 1, 128)
    wf = jnp.zeros((half + u1, out_w), jnp.float32)
    wf = wf.at[half:, :d_in].set(params["w6"])                 # decoder final weights
    wf = wf.at[:half, d_in].set(params["w4"][:, 0])            # risk final weights
    bf = jnp.zeros((out_w,), jnp.float32)
    bf = bf.at[:d_in].set(params["b6"])
    bf = bf.at[d_in].set(params["b4"][0])

    # bf16 matmul operands (f32 accumulation in-kernel); biases stay f32 rows.
    return {
        "w1": w1.astype(jnp.bfloat16),  "b1": b1[None, :].astype(jnp.float32),
        "w2": w2.astype(jnp.bfloat16),  "b2": b2[None, :].astype(jnp.float32),
        "w35": w35.astype(jnp.bfloat16), "b35": b35[None, :].astype(jnp.float32),
        "wf": wf.astype(jnp.bfloat16),  "bf": bf[None, :].astype(jnp.float32),
    }


def baseline_bn_autoencoder_forward(x, prep, *, tile_b_cap=2048,
                                    vmem_row_budget=12 << 20):
    """x: [B, input_shape] float32. Returns (decoded [B, input_shape], risk [B, 1])."""
    B, d_in = x.shape
    out_w = prep["wf"].shape[1]
    u1 = prep["w1"].shape[1]
    u2 = prep["w2"].shape[1]
    hu = prep["wf"].shape[0]      # half + u1

    # ---- batch tile: power of two (multiple of 16), within a VMEM byte budget ----
    per_row = (2 * d_in * 4           # x tile (f32), double-buffered
               + 2 * out_w * 2        # output slab (bf16), double-buffered
               + (u1 + u2 + hu + out_w) * 4)   # f32 matmul intermediates
    budget_rows = max(16, vmem_row_budget // per_row)
    tile_b = 16
    while tile_b * 2 <= min(tile_b_cap, budget_rows):
        tile_b *= 2
    # Keep >= 2 grid steps so the "parallel" batch axis shards across both TCs (v7x).
    tile_b = min(tile_b, max(16, _round_up(pl.cdiv(B, 2), 16)))
    if B <= tile_b:
        tile_b = B                 # full-batch block (equals array dim -> always legal)

    grid = (pl.cdiv(B, tile_b),)   # ragged last block is masked by Pallas; no jnp.pad

    resident = lambda a: pl.BlockSpec(a.shape, lambda i: (0, 0))  # VMEM-resident weights

    out = pl.pallas_call(
        _ae_kernel,
        out_shape=jax.ShapeDtypeStruct((B, out_w), jnp.bfloat16),
        grid=grid,
        in_specs=[
            pl.BlockSpec((tile_b, d_in), lambda i: (i, 0)),   # x: f32, tiled over batch
            resident(prep["w1"]), resident(prep["b1"]),
            resident(prep["w2"]), resident(prep["b2"]),
            resident(prep["w35"]), resident(prep["b35"]),
            resident(prep["wf"]), resident(prep["bf"]),
        ],
        out_specs=pl.BlockSpec((tile_b, out_w), lambda i: (i, 0)),
        compiler_params=pltpu.CompilerParams(
            dimension_semantics=("parallel",),
            vmem_limit_bytes=32 * 1024 * 1024,   # v7x-safe (64 MiB VMEM per TC)
        ),
    )(x, prep["w1"], prep["b1"], prep["w2"], prep["b2"],
      prep["w35"], prep["b35"], prep["wf"], prep["bf"])

    decoded = out[:, :d_in].astype(jnp.float32)
    risk = out[:, d_in:d_in + 1].astype(jnp.float32)
    return decoded, risk


def make_params(key, input_shape, num_ae_units1, num_ae_units2):
    """Deterministic synthetic parameters matching the PyTorch module's shapes.

    Linear weights are stored pre-transposed as [in, out]."""
    half = num_ae_units2 // 2

    def lin(k, fan_in, fan_out):
        kw, kb = jax.random.split(k)
        bound = 1.0 / jnp.sqrt(fan_in)
        w = jax.random.uniform(kw, (fan_in, fan_out), jnp.float32, -bound, bound)
        b = jax.random.uniform(kb, (fan_out,), jnp.float32, -bound, bound)
        return w, b

    def bn(k, dim):
        kg, kb, km, kv = jax.random.split(k, 4)
        g = 1.0 + 0.1 * jax.random.normal(kg, (dim,), jnp.float32)
        b = 0.1 * jax.random.normal(kb, (dim,), jnp.float32)
        m = 0.1 * jax.random.normal(km, (dim,), jnp.float32)
        v = 1.0 + 0.1 * jax.random.uniform(kv, (dim,), jnp.float32)
        return g, b, m, v

    keys = jax.random.split(key, 10)
    p = {}
    p["w1"], p["b1"] = lin(keys[0], input_shape, num_ae_units1)           # encoder L1
    p["bn1_g"], p["bn1_b"], p["bn1_m"], p["bn1_v"] = bn(keys[1], num_ae_units1)
    p["w2"], p["b2"] = lin(keys[2], num_ae_units1, num_ae_units2)         # encoder L2
    p["bn2_g"], p["bn2_b"], p["bn2_m"], p["bn2_v"] = bn(keys[3], num_ae_units2)
    p["w3"], p["b3"] = lin(keys[4], num_ae_units2, half)                  # risk L1
    p["bn3_g"], p["bn3_b"], p["bn3_m"], p["bn3_v"] = bn(keys[5], half)
    p["w4"], p["b4"] = lin(keys[6], half, 1)                              # risk L2
    p["w5"], p["b5"] = lin(keys[7], num_ae_units2, num_ae_units1)         # decoder L1
    p["bn5_g"], p["bn5_b"], p["bn5_m"], p["bn5_v"] = bn(keys[8], num_ae_units1)
    p["w6"], p["b6"] = lin(keys[9], num_ae_units1, input_shape)           # decoder L2
    return p


def reference_forward(x, params):
    """Pure-JAX f32 reference for correctness checking."""
    def bn(h, g, b, m, v, eps=1e-5):
        return g * (h - m) / jnp.sqrt(v + eps) + b

    h1 = jax.nn.relu(bn(x @ params["w1"] + params["b1"],
                        params["bn1_g"], params["bn1_b"], params["bn1_m"], params["bn1_v"]))
    h2 = jax.nn.relu(bn(h1 @ params["w2"] + params["b2"],
                        params["bn2_g"], params["bn2_b"], params["bn2_m"], params["bn2_v"]))
    r1 = jax.nn.relu(bn(h2 @ params["w3"] + params["b3"],
                        params["bn3_g"], params["bn3_b"], params["bn3_m"], params["bn3_v"]))
    risk = r1 @ params["w4"] + params["b4"]
    d1 = jax.nn.relu(bn(h2 @ params["w5"] + params["b5"],
                        params["bn5_g"], params["bn5_b"], params["bn5_m"], params["bn5_v"]))
    dec = d1 @ params["w6"] + params["b6"]
    return dec, risk


if __name__ == "__main__":
    # Small shapes consistent with the module's forward.
    B = 8
    INPUT_SHAPE = 32
    NUM_AE_UNITS1 = 64
    NUM_AE_UNITS2 = 32

    key = jax.random.PRNGKey(0)
    kx, kp = jax.random.split(key)
    x = jax.random.normal(kx, (B, INPUT_SHAPE), jnp.float32)
    params = make_params(kp, INPUT_SHAPE, NUM_AE_UNITS1, NUM_AE_UNITS2)

    # One-time parameter preparation (BN folding, fusions, bf16 casts) — done
    # once at model-load time, NOT per forward call.
    prep = prepare_baseline_bn_params(params)

    fwd = jax.jit(functools.partial(baseline_bn_autoencoder_forward, prep=prep))
    decoded, risk = fwd(x)
    jax.block_until_ready((decoded, risk))

    dec_ref, risk_ref = reference_forward(x, params)
    assert decoded.shape == (B, INPUT_SHAPE) and risk.shape == (B, 1)
    # bf16 matmul operands + bf16 output slab (f32 accumulation) vs f32 reference.
    assert jnp.allclose(decoded, dec_ref, atol=6e-2, rtol=6e-2)
    assert jnp.allclose(risk, risk_ref, atol=6e-2, rtol=6e-2)

    print("KERNEL_OK")
</pallas_src>

<mosaic_0001>
module attributes {stable_mosaic.version = 11 : i64} {
  func.func @_ae_kernel(%arg0: i32, %arg1: memref<8x32xf32, #tpu.memory_space<vmem>>, %arg2: memref<32x64xbf16, #tpu.memory_space<vmem>>, %arg3: memref<1x64xf32, #tpu.memory_space<vmem>>, %arg4: memref<64x32xbf16, #tpu.memory_space<vmem>>, %arg5: memref<1x32xf32, #tpu.memory_space<vmem>>, %arg6: memref<32x80xbf16, #tpu.memory_space<vmem>>, %arg7: memref<1x80xf32, #tpu.memory_space<vmem>>, %arg8: memref<80x128xbf16, #tpu.memory_space<vmem>>, %arg9: memref<1x128xf32, #tpu.memory_space<vmem>>, %arg10: memref<8x128xbf16, #tpu.memory_space<vmem>>) attributes {dimension_semantics = [#tpu.dimension_semantics<parallel>], iteration_bounds = array<i64: 1>, scalar_prefetch = 0 : i64, scratch_operands = 0 : i64, tpu.core_type = #tpu.core_type<tc>, window_params = [{transform_indices = @transform_0, window_bounds = array<i64: 8, 32>}, {pipeline_mode = #tpu.pipeline_mode<synchronous>, transform_indices = @transform_1, window_bounds = array<i64: 32, 64>}, {pipeline_mode = #tpu.pipeline_mode<synchronous>, transform_indices = @transform_2, window_bounds = array<i64: 1, 64>}, {pipeline_mode = #tpu.pipeline_mode<synchronous>, transform_indices = @transform_3, window_bounds = array<i64: 64, 32>}, {pipeline_mode = #tpu.pipeline_mode<synchronous>, transform_indices = @transform_4, window_bounds = array<i64: 1, 32>}, {pipeline_mode = #tpu.pipeline_mode<synchronous>, transform_indices = @transform_5, window_bounds = array<i64: 32, 80>}, {pipeline_mode = #tpu.pipeline_mode<synchronous>, transform_indices = @transform_6, window_bounds = array<i64: 1, 80>}, {pipeline_mode = #tpu.pipeline_mode<synchronous>, transform_indices = @transform_7, window_bounds = array<i64: 80, 128>}, {pipeline_mode = #tpu.pipeline_mode<synchronous>, transform_indices = @transform_8, window_bounds = array<i64: 1, 128>}, {transform_indices = @transform_9, window_bounds = array<i64: 8, 128>}]} {
    %c0 = arith.constant 0 : index
    %c0_0 = arith.constant 0 : index
    %0 = vector.load %arg1[%c0, %c0_0] : memref<8x32xf32, #tpu.memory_space<vmem>>, vector<8x32xf32>
    %1 = arith.truncf %0 : vector<8x32xf32> to vector<8x32xbf16>
    %c0_1 = arith.constant 0 : index
    %c0_2 = arith.constant 0 : index
    %2 = vector.load %arg2[%c0_1, %c0_2] : memref<32x64xbf16, #tpu.memory_space<vmem>>, vector<32x64xbf16>
    %cst = arith.constant dense<0.000000e+00> : vector<8x64xf32>
    %3 = tpu.matmul %1, %2, %cst {dimension_numbers = #tpu.dot_dimension_numbers<[1], [0], [0], [1], [0, 0, 1, 1], [], []>} : vector<8x32xbf16>, vector<32x64xbf16>, vector<8x64xf32> -> vector<8x64xf32>
    %c0_3 = arith.constant 0 : index
    %c0_4 = arith.constant 0 : index
    %4 = vector.load %arg3[%c0_3, %c0_4] : memref<1x64xf32, #tpu.memory_space<vmem>>, vector<1x64xf32>
    %5 = vector.broadcast %4 : vector<1x64xf32> to vector<8x64xf32>
    %6 = arith.addf %3, %5 : vector<8x64xf32>
    %cst_5 = arith.constant 0.000000e+00 : f32
    %7 = vector.broadcast %cst_5 : f32 to vector<8x64xf32>
    %8 = arith.maximumf %6, %7 : vector<8x64xf32>
    %9 = arith.truncf %8 : vector<8x64xf32> to vector<8x64xbf16>
    %c0_6 = arith.constant 0 : index
    %c0_7 = arith.constant 0 : index
    %10 = vector.load %arg4[%c0_6, %c0_7] : memref<64x32xbf16, #tpu.memory_space<vmem>>, vector<64x32xbf16>
    %cst_8 = arith.constant dense<0.000000e+00> : vector<8x32xf32>
    %11 = tpu.matmul %9, %10, %cst_8 {dimension_numbers = #tpu.dot_dimension_numbers<[1], [0], [0], [1], [0, 0, 1, 1], [], []>} : vector<8x64xbf16>, vector<64x32xbf16>, vector<8x32xf32> -> vector<8x32xf32>
    %c0_9 = arith.constant 0 : index
    %c0_10 = arith.constant 0 : index
    %12 = vector.load %arg5[%c0_9, %c0_10] : memref<1x32xf32, #tpu.memory_space<vmem>>, vector<1x32xf32>
    %13 = vector.broadcast %12 : vector<1x32xf32> to vector<8x32xf32>
    %14 = arith.addf %11, %13 : vector<8x32xf32>
    %cst_11 = arith.constant 0.000000e+00 : f32
    %15 = vector.broadcast %cst_11 : f32 to vector<8x32xf32>
    %16 = arith.maximumf %14, %15 : vector<8x32xf32>
    %17 = arith.truncf %16 : vector<8x32xf32> to vector<8x32xbf16>
    %c0_12 = arith.constant 0 : index
    %c0_13 = arith.constant 0 : index
    %18 = vector.load %arg6[%c0_12, %c0_13] : memref<32x80xbf16, #tpu.memory_space<vmem>>, vector<32x80xbf16>
    %cst_14 = arith.constant dense<0.000000e+00> : vector<8x80xf32>
    %19 = tpu.matmul %17, %18, %cst_14 {dimension_numbers = #tpu.dot_dimension_numbers<[1], [0], [0], [1], [0, 0, 1, 1], [], []>} : vector<8x32xbf16>, vector<32x80xbf16>, vector<8x80xf32> -> vector<8x80xf32>
    %c0_15 = arith.constant 0 : index
    %c0_16 = arith.constant 0 : index
    %20 = vector.load %arg7[%c0_15, %c0_16] : memref<1x80xf32, #tpu.memory_space<vmem>>, vector<1x80xf32>
    %21 = vector.broadcast %20 : vector<1x80xf32> to vector<8x80xf32>
    %22 = arith.addf %19, %21 : vector<8x80xf32>
    %cst_17 = arith.constant 0.000000e+00 : f32
    %23 = vector.broadcast %cst_17 : f32 to vector<8x80xf32>
    %24 = arith.maximumf %22, %23 : vector<8x80xf32>
    %25 = arith.truncf %24 : vector<8x80xf32> to vector<8x80xbf16>
    %c0_18 = arith.constant 0 : index
    %c0_19 = arith.constant 0 : index
    %26 = vector.load %arg8[%c0_18, %c0_19] : memref<80x128xbf16, #tpu.memory_space<vmem>>, vector<80x128xbf16>
    %cst_20 = arith.constant dense<0.000000e+00> : vector<8x128xf32>
    %27 = tpu.matmul %25, %26, %cst_20 {dimension_numbers = #tpu.dot_dimension_numbers<[1], [0], [0], [1], [0, 0, 1, 1], [], []>} : vector<8x80xbf16>, vector<80x128xbf16>, vector<8x128xf32> -> vector<8x128xf32>
    %c0_21 = arith.constant 0 : index
    %c0_22 = arith.constant 0 : index
    %28 = vector.load %arg9[%c0_21, %c0_22] : memref<1x128xf32, #tpu.memory_space<vmem>>, vector<1x128xf32>
    %29 = vector.broadcast %28 : vector<1x128xf32> to vector<8x128xf32>
    %30 = arith.addf %27, %29 : vector<8x128xf32>
    %31 = arith.truncf %30 : vector<8x128xf32> to vector<8x128xbf16>
    %c0_23 = arith.constant 0 : index
    %c0_24 = arith.constant 0 : index
    %32 = vector.load %arg10[%c0_23, %c0_24] : memref<8x128xbf16, #tpu.memory_space<vmem>>, vector<8x128xbf16>
    tpu.vector_store %arg10[%c0_23, %c0_24], %31 {strides = array<i32>} : memref<8x128xbf16, #tpu.memory_space<vmem>>, vector<8x128xbf16>,
    return
  }
  func.func @transform_0(%arg0: i32) -> (i32, i32) {
    %c0_i32 = arith.constant 0 : i32
    %c0_i32_0 = arith.constant 0 : i32
    return %arg0, %c0_i32 : i32, i32
  }
  func.func @transform_1(%arg0: i32) -> (i32, i32) {
    %c0_i32 = arith.constant 0 : i32
    %c0_i32_0 = arith.constant 0 : i32
    %c0_i32_1 = arith.constant 0 : i32
    return %c0_i32, %c0_i32_0 : i32, i32
  }
  func.func @transform_2(%arg0: i32) -> (i32, i32) {
    %c0_i32 = arith.constant 0 : i32
    %c0_i32_0 = arith.constant 0 : i32
    %c0_i32_1 = arith.constant 0 : i32
    return %c0_i32, %c0_i32_0 : i32, i32
  }
  func.func @transform_3(%arg0: i32) -> (i32, i32) {
    %c0_i32 = arith.constant 0 : i32
    %c0_i32_0 = arith.constant 0 : i32
    %c0_i32_1 = arith.constant 0 : i32
    return %c0_i32, %c0_i32_0 : i32, i32
  }
  func.func @transform_4(%arg0: i32) -> (i32, i32) {
    %c0_i32 = arith.constant 0 : i32
    %c0_i32_0 = arith.constant 0 : i32
    %c0_i32_1 = arith.constant 0 : i32
    return %c0_i32, %c0_i32_0 : i32, i32
  }
  func.func @transform_5(%arg0: i32) -> (i32, i32) {
    %c0_i32 = arith.constant 0 : i32
    %c0_i32_0 = arith.constant 0 : i32
    %c0_i32_1 = arith.constant 0 : i32
    return %c0_i32, %c0_i32_0 : i32, i32
  }
  func.func @transform_6(%arg0: i32) -> (i32, i32) {
    %c0_i32 = arith.constant 0 : i32
    %c0_i32_0 = arith.constant 0 : i32
    %c0_i32_1 = arith.constant 0 : i32
    return %c0_i32, %c0_i32_0 : i32, i32
  }
  func.func @transform_7(%arg0: i32) -> (i32, i32) {
    %c0_i32 = arith.constant 0 : i32
    %c0_i32_0 = arith.constant 0 : i32
    %c0_i32_1 = arith.constant 0 : i32
    return %c0_i32, %c0_i32_0 : i32, i32
  }
  func.func @transform_8(%arg0: i32) -> (i32, i32) {
    %c0_i32 = arith.constant 0 : i32
    %c0_i32_0 = arith.constant 0 : i32
    %c0_i32_1 = arith.constant 0 : i32
    return %c0_i32, %c0_i32_0 : i32, i32
  }
  func.func @transform_9(%arg0: i32) -> (i32, i32) {
    %c0_i32 = arith.constant 0 : i32
    %c0_i32_0 = arith.constant 0 : i32
    return %arg0, %c0_i32 : i32, i32
  }
}

</mosaic_0001>

<bundles_post_ra>
// kernel: baseline_bn_autoencoder_forward.1
= control target key start
LH: loop header
LB: loop body
LE: loop exit
PB: predicated region body
PF: predicated region fallthrough
CT: control target
= control target key end

     0   :  { %14 = vsyncpa [#allocation3], 0  ;;  %s663_s0 = inlined_call_operand.hbm [shape: f32[8,32], index: 0, kind: input, shape index: {}]   ;;  %s664_s1 = inlined_call_operand.hbm [shape: bf16[32,64], index: 1, kind: input, shape index: {}]   ;;  %s665_s2 = inlined_call_operand.hbm [shape: f32[1,64], index: 2, kind: input, shape index: {}]   ;;  %s666_s3 = inlined_call_operand.hbm [shape: bf16[64,32], index: 3, kind: input, shape index: {}]   ;;  %s667_s4 = inlined_call_operand.vmem [shape: f32[1,32], index: 4, kind: input, shape index: {}]   ;;  %s668_s5 = inlined_call_operand.hbm [shape: bf16[32,80], index: 5, kind: input, shape index: {}]   ;;  %s669_s6 = inlined_call_operand.vmem [shape: f32[1,80], index: 6, kind: input, shape index: {}]   ;;  %s670_s7 = inlined_call_operand.hbm [shape: bf16[80,128], index: 7, kind: input, shape index: {}]   ;;  %s671_s8 = inlined_call_operand.vmem [shape: f32[1,128], index: 8, kind: input, shape index: {}]   ;;  %s672_s9 = inlined_call_operand.vmem [shape: bf16[8,128], index: 9, kind: output, shape index: {}]  }
   0x1   :  { %15 = vsyncpa [#allocation5], 0 }
   0x2   :  { %16 = vsyncpa [#allocation8], 0  ;;  %s33_s11 = sshll.u32 %s664_s1, 4  ;;  %s34_s11 = int_to_ptr.hbm [resolvable:$true] %s33_s11 }
   0x3   :  { %17 = vsyncpa [#allocation11], 0  ;;  %s561_s12 = smov [#allocation4]   ;;  %s57_s16 = sshll.u32 %s666_s3, 4  ;;  %s58_s16 = int_to_ptr.hbm [resolvable:$true] %s57_s16 }
   0x4   :  { %s35_s13 = sshll.u32 %s561_s12, 4  ;;  %s562_s17 = smov 64   ;;  %s36_s13 = int_to_ptr.vmem [resolvable:$true] %s35_s13 }
   0x5   :  { %s563_s18 = smov 4   ;;  %s564_s19 = smov [#allocation7]  }
   0x6   :  { %41 = dma.hbm_to_vmem [thread:$0]  %s34_s11, 256, %s36_s13, [#allocation5], %s562_s17, %s562_s17, %s563_s18  }
   0x7   :  { %s59_s20 = sshll.u32 %s564_s19, 4  ;;  %s23_s22 = sshll.u32 %s663_s0, 4  ;;  %s60_s20 = int_to_ptr.vmem [resolvable:$true] %s59_s20  ;;  %s24_s22 = int_to_ptr.hbm [resolvable:$true] %s23_s22 }
   0x8   :  { %65 = dma.hbm_to_vmem [thread:$0]  %s58_s16, 512, %s60_s20, [#allocation8], %s562_s17, %s562_s17, %s563_s18  }
   0x9   :  { %s47_s24 = sshll.u32 %s665_s2, 4  ;;  %s565_s25 = smov [#allocation2]   ;;  %s48_s24 = int_to_ptr.hbm [resolvable:$true] %s47_s24 }
   0xa   :  { %s25_s26 = sshll.u32 %s565_s25, 4  ;;  %s566_s27 = smov [#allocation6]   ;;  %s26_s26 = int_to_ptr.vmem [resolvable:$true] %s25_s26 }
   0xb   :  { %28 = dma.hbm_to_vmem [thread:$0]  %s24_s22, 128, %s26_s26, [#allocation3]  }
   0xc   :  { %s49_s28 = sshll.u32 %s566_s27, 4  ;;  %s72_s0 = sshll.u32 %s668_s5, 4  ;;  %s50_s28 = int_to_ptr.vmem [resolvable:$true] %s49_s28  ;;  %s73_s0 = int_to_ptr.hbm [resolvable:$true] %s72_s0 }
   0xd   :  { %52 = dma.hbm_to_vmem [thread:$0]  %s48_s24, 16, %s50_s28, [#allocation5]  }
   0xe   :  { %s87_s12 = sshll.u32 %s670_s7, 4  ;;  %s567_s13 = smov [#allocation9]   ;;  %s88_s12 = int_to_ptr.hbm [resolvable:$true] %s87_s12 }
   0xf   :  { %s74_s2 = sshll.u32 %s567_s13, 4  ;;  %s568_s14 = smov [#allocation10]   ;;  %s75_s2 = int_to_ptr.vmem [resolvable:$true] %s74_s2 }
  0x10   :  { %80 = dma.hbm_to_vmem [thread:$0]  %s73_s0, 256, %s75_s2, [#allocation8], %s562_s17, %s562_s17, %s563_s18  }
  0x11   :  { %s89_s15 = sshll.u32 %s568_s14, 4  ;;  %s90_s15 = int_to_ptr.vmem [resolvable:$true] %s89_s15 }
  0x12   :  { %95 = dma.hbm_to_vmem [thread:$0]  %s88_s12, 640, %s90_s15, [#allocation11], %s562_s17, %s562_s17, %s563_s18  }
  0x13   :  { %553 = dma.done.wait [#allocation3], 128  }
  0x14   :  { %554 = vsyncadd [#allocation3], 4294967168 }
  0x15   :  { %555 = dma.done.wait [#allocation5], 272  }
  0x16   :  { %556 = vsyncadd [#allocation5], 4294967024 }
  0x17   :  { %557 = dma.done.wait [#allocation8], 768  }
  0x18   :  { %558 = vsyncadd [#allocation8], 4294966528 }
  0x19   :  { %559 = dma.done.wait [#allocation11], 640  }
  0x1a   :  { %560 = vsyncadd [#allocation11], 4294966656  ;;  %v385_v0 = vld [vmem:[#allocation4 + $0x8] sm:$0xff]  ;;  %v384_v1 = vld [vmem:[#allocation4] sm:$0xff]  ;;  %vm145_vm0 = vcmask 261120   ;;  %vm200_vm1 = vcmask 523264  }
  0x1b   :  { %v389_v2 = vld [vmem:[#allocation7 + $0x18] sm:$0xff]  ;;  %155 = vmatpush.bf16.msra.mxu0 %v385_v0  ;;  %v123_v3 = vld [vmem:[#allocation2] sm:$0xff]  ;;  %v388_v4 = vld [vmem:[#allocation7 + $0x10] sm:$0xff]  ;;  %vm301_vm2 = vcmask 654336  }
  0x1c   :  { %208 = vmatpush.bf16.msra.mxu1 %v389_v2  ;;  %v124_v5 = vpack.c.bf16 %v123_v3, %v123_v3  ;;  %v387_v6 = vld [vmem:[#allocation7 + $0x8] sm:$0xff]  ;;  %v386_v7 = vld [vmem:[#allocation7] sm:$0xff]  ;;  %v405_v8 = vld [vmem:[#allocation6] ss:$0 sm:$0xff] }
  0x1d   :  { %v391_v14 = vld [vmem:[#allocation9 + $0x8] sm:$0xff]  ;;  %v390_v15 = vld [vmem:[#allocation9] sm:$0xff]  ;;  %v396_v16 = vld [vmem:[#allocation10 + $0x20] sm:$0xff] }
  0x1e   :  { %248 = vmatpush.bf16.msra.mxu2 %v391_v14  ;;  %308 = vmatpush.bf16.msra.mxu3 %v396_v16  ;;  %v395_v17 = vld [vmem:[#allocation10 + $0x18] sm:$0xff]  ;;  %v394_v18 = vld [vmem:[#allocation10 + $0x10] sm:$0xff]  ;;  %v393_v25 = vld [vmem:[#allocation10 + $0x8] sm:$0xff] }
  0x1f   :  { %156 = vmatpush.bf16.msra.mxu0 %v384_v1  ;;  %v406_v19 = vld [vmem:[%s667_s4] ss:$0 sm:$0xff]  ;;  %v392_v26 = vld [vmem:[#allocation10] sm:$0xff] }
  0x20   :  { %209 = vmatpush.bf16.msra.mxu1 %v388_v4  ;;  %v407_v27 = vld [vmem:[%s669_s6] ss:$0 sm:$0xff] }
  0x21   :  { %v408_v33 = vld [vmem:[%s671_s8] ss:$0 sm:$0xff] }
  0x22   :  { %336 = vmatmul.msk.bf16.vlgmr.msra.gmra.mxu0 %vm145_vm0, %v124_v5  ;;  %249 = vmatpush.bf16.msra.mxu2 %v390_v15 }
  0x23   :  { %309 = vmatpush.bf16.msra.mxu3 %v395_v17 }
  0x24   :  { %210 = vmatpush.bf16.msra.mxu1 %v387_v6 }
  0x27   :  { %310 = vmatpush.bf16.msra.mxu3 %v394_v18 }
  0x28   :  { %211 = vmatpush.bf16.msra.mxu1 %v386_v7 }
  0x2b   :  { %311 = vmatpush.bf16.msra.mxu3 %v393_v25 }
  0x2f   :  { %312 = vmatpush.bf16.msra.mxu3 %v392_v26 }
  0x9f   :  { %v158_v9 = vpop.f32.mrf.mxu0 }
  0xa0   :  { %v159_v10 = vadd.f32 %v405_v8, %v158_v9 }
  0xa2   :  { %v162_v11 = vmax.f32 %v159_v10, 0.0 }
  0xa4   :  { %v163_v12 = vpack.c.bf16 %v162_v11, %v162_v11 }
  0xa6   :  { %353 = vmatmul.msk.bf16.vlgmr.msra.gmra.mxu1 %vm200_vm1, %v163_v12 }
  0xa7   :  { %v160_v13 = vpop.f32.mrf.mxu0 }
 0x123   :  { %v213_v20 = vpop.f32.mrf.mxu1 }
 0x124   :  { %v214_v21 = vadd.f32 %v406_v19, %v213_v20 }
 0x126   :  { %v217_v22 = vmax.f32 %v214_v21, 0.0 }
 0x128   :  { %v218_v23 = vpack.c.bf16 %v217_v22, %v217_v22 }
 0x12a   :  { %362 = vmatmul.msk.bf16.vlgmr.msra.gmra.mxu2 %vm145_vm0, %v218_v23 }
 0x12b   :  { %v215_v24 = vpop.f32.mrf.mxu1 }
 0x1ad   :  { %v251_v28 = vpop.f32.mrf.mxu2 }
 0x1ae   :  { %v252_v29 = vadd.f32 %v407_v27, %v251_v28 }
 0x1b0   :  { %v255_v30 = vmax.f32 %v252_v29, 0.0 }
 0x1b2   :  { %v256_v31 = vpack.c.bf16 %v255_v30, %v255_v30 }
 0x1b4   :  { %383 = vmatmul.msk.bf16.vlgmr.msra.gmra.mxu3 %vm301_vm2, %v256_v31 }
 0x1b5   :  { %v253_v32 = vpop.f32.mrf.mxu2 }
 0x237   :  { %v314_v34 = vpop.f32.mrf.mxu3 }
 0x238   :  { %v315_v35 = vadd.f32 %v408_v33, %v314_v34 }
 0x23a   :  { %v318_v36 = vpack.c.bf16 %v315_v35, %v315_v35 }
 0x23c   :  { %319 = vst [vmem:[%s672_s9] sm:$0xf] %v318_v36 }
 0x23f   :  { %v316_v37 = vpop.f32.mrf.mxu3 }
 0x240   :  { %324 = vsyncpa [#allocation3], 1 }
 0x241   :  { %325 = vsyncpa [#allocation5], 1 }
 0x242   :  { %326 = vsyncpa [#allocation8], 1 }
 0x243   :  { %327 = vsyncpa [#allocation11], 1 }

</bundles_post_ra>
